<compile_context>
chip_gen: v7x
topology: tpu7x:2x2x1
jax: 0.10.0
libtpu: 0.0.40
codegen_flags: <defaults>
</compile_context>

<pallas_src>
import functools

import jax
import jax.numpy as jnp
from jax.experimental import pallas as pl
from jax.experimental.pallas import tpu as pltpu

_LANES = 128
_MAX_COLS = 2048                  # 8 KiB/row f32: lane-dense, contiguous DMA rows
_TILE_BYTES = 2 * 1024 * 1024     # ~2 MiB/buffer; 2 in + 2 out double-buffered = 8 MiB
_SUBLANE_QUANT = 32               # multiple of 8 (f32) / 16 (bf16) / 32 (int8) packing


def _xform_tile_kernel(x_ref, o_ref):
    # One lane-dense (tile_rows, cols) VMEM tile.  Base `cc.Transform` -> identity.
    # TODO(synk): concrete AutoBatchTransform subclasses (noise, smoothing, ...)
    # replace this body; elementwise bodies keep this flat layout, spatially
    # structured ones would switch back to an (N, C, th, W) tiling.
    o_ref[...] = x_ref[...]


def _plan_2d(total_elems, itemsize):
    """Choose a lane-dense (rows, cols) layout and a VMEM-sized row tile.

    Prefers the largest power-of-two column count (multiple of 128, <= 2048)
    that divides `total_elems` exactly -> zero padding for typical image sizes.
    Falls back to the largest candidate (padding < cols elements) otherwise.
    """
    candidates = []
    c = _LANES
    while c <= _MAX_COLS and c <= max(total_elems, _LANES):
        candidates.append(c)
        c *= 2
    cols = None
    for cand in reversed(candidates):
        if total_elems % cand == 0:
            cols = cand
            break
    if cols is None:
        cols = candidates[-1]
    rows = pl.cdiv(total_elems, cols)
    cap = max(_SUBLANE_QUANT, _TILE_BYTES // (cols * itemsize))
    cap -= cap % _SUBLANE_QUANT
    # If all rows fit in one tile, the block equals the full array (any row
    # count is legal); otherwise the tile is a multiple of 32 sublanes and the
    # trailing partial block (if any) is masked by Pallas.
    tile_rows = rows if rows <= cap else cap
    return rows, cols, tile_rows


@functools.partial(jax.jit, static_argnums=(1, 2, 3))
def _identity_copy_2d(flat, rows, cols, tile_rows):
    """Run the per-element XForm kernel over a flat slab, lane-dense tiled."""
    total = flat.shape[0]
    padded = rows * cols
    if padded != total:
        flat = jnp.pad(flat, (0, padded - total))
    x2d = flat.reshape(rows, cols)

    out2d = pl.pallas_call(
        _xform_tile_kernel,
        out_shape=jax.ShapeDtypeStruct((rows, cols), x2d.dtype),
        grid_spec=pltpu.PrefetchScalarGridSpec(
            num_scalar_prefetch=0,
            grid=(pl.cdiv(rows, tile_rows),),
            in_specs=[pl.BlockSpec((tile_rows, cols), lambda i: (i, 0))],
            out_specs=pl.BlockSpec((tile_rows, cols), lambda i: (i, 0)),
        ),
        input_output_aliases={0: 0},          # output reuses the input HBM buffer
        compiler_params=pltpu.CompilerParams(
            dimension_semantics=("parallel",),   # v7x: shard row tiles across 2 TCs
            vmem_limit_bytes=32 * 1024 * 1024,   # v5e scoped default is only 16 MiB
        ),
    )(x2d)

    out_flat = out2d.reshape(-1)
    if padded != total:
        out_flat = out_flat[:total]
    return out_flat


def _run_kernel_path(tensors):
    """Subclass hook: apply the Pallas XForm kernel to every tensor.

    All same-dtype tensors are packed into one lane-dense slab so there is a
    single pallas_call per dtype (not one per tiny tensor).
    """
    outs = [None] * len(tensors)
    by_dtype = {}
    for i, t in enumerate(tensors):
        by_dtype.setdefault(jnp.dtype(t.dtype), []).append(i)
    for dt, idxs in by_dtype.items():
        flats = [tensors[i].reshape(-1) for i in idxs]
        sizes = [int(f.shape[0]) for f in flats]
        slab = flats[0] if len(flats) == 1 else jnp.concatenate(flats)
        rows, cols, tile_rows = _plan_2d(int(slab.shape[0]), dt.itemsize)
        out_flat = _identity_copy_2d(slab, rows, cols, tile_rows)
        off = 0
        for i, sz in zip(idxs, sizes):
            outs[i] = out_flat[off:off + sz].reshape(tensors[i].shape)
            off += sz
    return tuple(outs)


def auto_batch_transform(*args, force_kernel=False, **kwargs):
    """JAX/Pallas equivalent of AutoBatchTransform.forward.

    The base-class XForm (cc.Transform) is the identity, so the default path
    short-circuits and returns the inputs untouched (zero HBM traffic, zero
    launches).  `force_kernel=True` exercises the Pallas kernel path that
    concrete subclasses would use.  kwargs are accepted (and ignored by the
    identity base transform) to mirror `self.xform(*args, **kwargs)`.
    """
    if len(args) == 1 and isinstance(args[0], (list, tuple)):
        args = tuple(args[0])
    if force_kernel:
        outs = _run_kernel_path(args)
    else:
        outs = tuple(args)            # identity base transform: short-circuit
    if len(outs) == 1:
        return outs[0]
    return outs


if __name__ == "__main__":
    key = jax.random.PRNGKey(0)
    k1, k2 = jax.random.split(key)

    # Small NCHW inputs consistent with an image-synthesis transform.
    x = jax.random.normal(k1, (2, 4, 16, 16), dtype=jnp.float32)
    y = jax.random.normal(k2, (2, 1, 16, 16), dtype=jnp.float32)

    # Default (base-class) path: identity XForm is short-circuited.
    out_x = auto_batch_transform(x)
    out_x = jax.block_until_ready(out_x)
    assert out_x.shape == x.shape and out_x.dtype == x.dtype
    assert bool(jnp.allclose(out_x, x))

    out_x2, out_y2 = auto_batch_transform((x, y))
    assert bool(jnp.allclose(out_x2, x)) and bool(jnp.allclose(out_y2, y))

    # Subclass-hook path: force the Pallas kernel (lane-dense slab, one call per
    # dtype, aliased output) and verify it reproduces the identity transform.
    kx = auto_batch_transform(x, force_kernel=True)
    kx = jax.block_until_ready(kx)
    assert kx.shape == x.shape and kx.dtype == x.dtype
    assert bool(jnp.allclose(kx, x))

    kx2, ky2 = auto_batch_transform((x, y), force_kernel=True)
    kx2 = jax.block_until_ready(kx2)
    ky2 = jax.block_until_ready(ky2)
    assert kx2.shape == x.shape and ky2.shape == y.shape
    assert bool(jnp.allclose(kx2, x)) and bool(jnp.allclose(ky2, y))

    print("KERNEL_OK")
</pallas_src>

<mosaic_0001>
module attributes {stable_mosaic.version = 11 : i64} {
  func.func @_xform_tile_kernel(%arg0: i32, %arg1: memref<1x2048xf32, #tpu.memory_space<vmem>>, %arg2: memref<1x2048xf32, #tpu.memory_space<vmem>>) attributes {dimension_semantics = [#tpu.dimension_semantics<parallel>], iteration_bounds = array<i64: 1>, scalar_prefetch = 0 : i64, scratch_operands = 0 : i64, tpu.core_type = #tpu.core_type<tc>, window_params = [{transform_indices = @transform_0, window_bounds = array<i64: 1, 2048>}, {transform_indices = @transform_1, window_bounds = array<i64: 1, 2048>}]} {
    %c0 = arith.constant 0 : index
    %c0_0 = arith.constant 0 : index
    %0 = vector.load %arg1[%c0, %c0_0] : memref<1x2048xf32, #tpu.memory_space<vmem>>, vector<1x2048xf32>
    %c0_1 = arith.constant 0 : index
    %c0_2 = arith.constant 0 : index
    %1 = vector.load %arg2[%c0_1, %c0_2] : memref<1x2048xf32, #tpu.memory_space<vmem>>, vector<1x2048xf32>
    tpu.vector_store %arg2[%c0_1, %c0_2], %0 {strides = array<i32>} : memref<1x2048xf32, #tpu.memory_space<vmem>>, vector<1x2048xf32>,
    return
  }
  func.func @transform_0(%arg0: i32) -> (i32, i32) {
    %c0_i32 = arith.constant 0 : i32
    %c0_i32_0 = arith.constant 0 : i32
    return %arg0, %c0_i32 : i32, i32
  }
  func.func @transform_1(%arg0: i32) -> (i32, i32) {
    %c0_i32 = arith.constant 0 : i32
    %c0_i32_0 = arith.constant 0 : i32
    return %arg0, %c0_i32 : i32, i32
  }
}

</mosaic_0001>

<bundles_post_ra>
// kernel: _identity_copy_2d.1
= control target key start
LH: loop header
LB: loop body
LE: loop exit
PB: predicated region body
PF: predicated region fallthrough
CT: control target
= control target key end

     0   :  { %s38_s0 = inlined_call_operand.vmem [shape: f32[1,2048], index: 0, kind: input, shape index: {}, may-alias: {0,1}]   ;;  %s39_s1 = inlined_call_operand.vmem [shape: f32[1,2048], index: 1, kind: output, shape index: {}, may-alias: {0,1}]  }
   0x1   :  { %v8_v0 = vld [vmem:[%s38_s0] sm:$0xff]  ;;  %v9_v1 = vld [vmem:[%s38_s0 + $0x8] sm:$0xff] }
   0x2   :  { %10 = vst [vmem:[%s39_s1] sm:$0xff] %v8_v0  ;;  %11 = vst [vmem:[%s39_s1 + $0x8] sm:$0xff] %v9_v1 }

</bundles_post_ra>
